<compile_context>
chip_gen: v5e
topology: v5e:2x2
jax: 0.10.0
libtpu: 0.0.40
codegen_flags: <defaults>
</compile_context>

<pallas_src>
import math

import jax
import jax.numpy as jnp
from jax.experimental import pallas as pl
from jax.experimental.pallas import tpu as pltpu

_SUBLANES = 8
_LANES = 128
# Biggest M tile.  Footprint is dominated by the (TM, K) output block whose
# VMEM tiling pads K=2 lanes up to 128; at TM=4096 that is ~2 MiB per buffer,
# comfortably inside even v5e's 16 MiB default scoped VMEM.  Sweep higher
# (8192+) together with CompilerParams(vmem_limit_bytes=...) if desired.
_MAX_TILE_M = 4096


def _model_kernel(w_ref, b_ref, x_ref, o_ref):
    """out[m, k] = act(sum_n w[k,n] * x[n,m] + b[k]),  act(v) = relu(v)*v.

    w_ref: (K*N,) f32 in SMEM (flat -> no 2-D SMEM padding)
    b_ref: (K,)   f32 in SMEM
    x_ref: (N, TM) in VMEM (batch squeezed, M lane-dense)
    o_ref: (TM, K) in VMEM -> written in the final (B, M, K) layout directly
    """
    n_in, tm = x_ref.shape
    k_out = o_ref.shape[-1]

    x = x_ref[...].astype(jnp.float32)                    # (N, TM), f32 accum

    # Unrolled VPU FMAs (N, K tiny & static); fuse relu(v)*v as select-of-square.
    acts = []
    for k in range(k_out):
        acc = x[0:1, :] * w_ref[k * n_in + 0]
        for n in range(1, n_in):
            acc = acc + x[n:n + 1, :] * w_ref[k * n_in + n]
        acc = acc + b_ref[k]
        acts.append(jnp.where(acc > 0.0, acc * acc, 0.0))  # (1, TM)

    # Embed the K result rows in a sublane-aligned (8, TM) tile (rows >= K are
    # don't-care copies), so the layout swap is a clean (8*a, 128*b) transpose.
    sub = jax.lax.broadcasted_iota(jnp.int32, (_SUBLANES, tm), 0)
    v8 = jnp.broadcast_to(acts[k_out - 1], (_SUBLANES, tm))
    for k in range(k_out - 2, -1, -1):
        v8 = jnp.where(sub == k, acts[k], v8)

    # XLU transpose on data already in VMEM (no extra HBM pass), then keep the
    # first K lanes.  Masked K=2-wide store is far cheaper than an extra HBM
    # round trip for the layout swap.
    t = jnp.transpose(v8)                                  # (TM, 8)
    o_ref[...] = t[:, :k_out].astype(o_ref.dtype)


def reference_forward(x, weight, bias):
    v1 = jnp.transpose(x, (0, 2, 1))                               # (B, M, N)
    v2 = jnp.einsum("bmn,kn->bmk", v1, weight) + bias[None, None, :]
    return jnp.maximum(v2, 0.0) * v2


def _round_up(v, m):
    return ((v + m - 1) // m) * m


def _pallas_forward(x, weight, bias):
    B, N, M = x.shape
    K = weight.shape[0]

    # Lane-dense tiling of M.
    mp0 = _round_up(M, _LANES)
    tm = min(_MAX_TILE_M, mp0)
    if B == 1 and mp0 >= 2 * _LANES:
        # Keep >= 2 grid steps along a "parallel" axis so both v7x TensorCores
        # get work (irrelevant on single-TC v5e/v6e, harmless there).
        tm = min(tm, max(_LANES, (mp0 // 2) // _LANES * _LANES))
    mp = _round_up(mp0, tm)

    if mp != M:
        # Zero padding -> padded columns produce finite values, sliced off below.
        x = jnp.pad(x, ((0, 0), (0, 0), (0, mp - M)))

    grid = (B, mp // tm)

    itemsize = jnp.dtype(x.dtype).itemsize
    cost = pl.CostEstimate(
        flops=2 * B * mp * K * (N + 1),
        transcendentals=0,
        bytes_accessed=B * N * mp * itemsize + B * mp * K * itemsize
        + (weight.size + bias.size) * 4,
    )

    out = pl.pallas_call(
        _model_kernel,
        out_shape=jax.ShapeDtypeStruct((B, mp, K), x.dtype),
        grid=grid,
        in_specs=[
            pl.BlockSpec(memory_space=pltpu.MemorySpace.SMEM),    # weight (K*N,)
            pl.BlockSpec(memory_space=pltpu.MemorySpace.SMEM),    # bias   (K,)
            pl.BlockSpec((None, N, tm), lambda b, m: (b, 0, m)),  # x tile (N, tm)
        ],
        out_specs=pl.BlockSpec((None, tm, K), lambda b, m: (b, m, 0)),
        compiler_params=pltpu.CompilerParams(
            dimension_semantics=("parallel", "parallel"),
        ),
        cost_estimate=cost,
    )(
        weight.astype(jnp.float32).reshape(-1),
        bias.astype(jnp.float32),
        x,
    )

    if mp != M:
        out = out[:, :M, :]
    return out


def model_forward(x, weight, bias):
    """x: (B, N, M) (torch input layout), weight: (K, N), bias: (K,) -> (B, M, K)."""
    B, N, M = x.shape
    K, Nw = weight.shape
    assert N == Nw, "in_features mismatch"
    if M < _LANES or K > _SUBLANES:
        # Tiny M (e.g. the torch spec's (1, 2, 2)): pallas_call launch overhead
        # dwarfs the work, so plain jnp is strictly faster and exactly equivalent.
        return reference_forward(x, weight, bias)
    return _pallas_forward(x, weight, bias)


if __name__ == "__main__":
    key = jax.random.PRNGKey(0)
    kx1, kw, kb, kx2, kx3 = jax.random.split(key, 5)

    # Deterministic Linear(2, 2) parameters (uniform(-1/sqrt(2), 1/sqrt(2)) like torch init).
    bound = 1.0 / math.sqrt(2.0)
    weight = jax.random.uniform(kw, (2, 2), minval=-bound, maxval=bound, dtype=jnp.float32)
    bias = jax.random.uniform(kb, (2,), minval=-bound, maxval=bound, dtype=jnp.float32)

    # 1) The torch spec's input shape (1, 2, 2): tiny-M jnp short-circuit.
    x1 = jax.random.normal(kx1, (1, 2, 2), dtype=jnp.float32)
    out1 = jax.block_until_ready(model_forward(x1, weight, bias))
    ref1 = reference_forward(x1, weight, bias)
    assert out1.shape == (1, 2, 2)
    assert jnp.allclose(out1, ref1, atol=1e-5, rtol=1e-5)

    # 2) Pallas path: B > 1, M a multiple of 128 (no padding), one m-tile per batch.
    x2 = jax.random.normal(kx2, (2, 2, 1024), dtype=jnp.float32)
    out2 = jax.block_until_ready(model_forward(x2, weight, bias))
    ref2 = reference_forward(x2, weight, bias)
    assert out2.shape == (2, 1024, 2)
    assert jnp.allclose(out2, ref2, atol=1e-5, rtol=1e-5)

    # 3) Pallas path: B == 1 with ragged M — exercises lane padding + output
    #    slice and the ">=2 parallel m-tiles" cap that keeps both v7x TCs busy.
    x3 = jax.random.normal(kx3, (1, 2, 1000), dtype=jnp.float32)
    out3 = jax.block_until_ready(model_forward(x3, weight, bias))
    ref3 = reference_forward(x3, weight, bias)
    assert out3.shape == (1, 1000, 2)
    assert jnp.allclose(out3, ref3, atol=1e-5, rtol=1e-5)

    print("KERNEL_OK")
</pallas_src>

<mosaic_0001>
module attributes {stable_mosaic.version = 11 : i64} {
  func.func @_model_kernel(%arg0: i32, %arg1: i32, %arg2: memref<4xf32, #tpu.memory_space<smem>>, %arg3: memref<2xf32, #tpu.memory_space<smem>>, %arg4: memref<1x2x1024xf32, #tpu.memory_space<vmem>>, %arg5: memref<1x1024x2xf32, #tpu.memory_space<vmem>>) attributes {dimension_semantics = [#tpu.dimension_semantics<parallel>, #tpu.dimension_semantics<parallel>], iteration_bounds = array<i64: 2, 1>, scalar_prefetch = 0 : i64, scratch_operands = 0 : i64, tpu.core_type = #tpu.core_type<tc>, window_params = [{transform_indices = @transform_0, window_bounds = array<i64: 4>}, {transform_indices = @transform_1, window_bounds = array<i64: 2>}, {transform_indices = @transform_2, window_bounds = array<i64: 1, 2, 1024>}, {transform_indices = @transform_3, window_bounds = array<i64: 1, 1024, 2>}]} {
    %c0 = arith.constant 0 : index
    %c0_0 = arith.constant 0 : index
    %c0_1 = arith.constant 0 : index
    %0 = vector.load %arg4[%c0, %c0_0, %c0_1] : memref<1x2x1024xf32, #tpu.memory_space<vmem>>, vector<1x2x1024xf32>
    %1 = vector.shape_cast %0 : vector<1x2x1024xf32> to vector<2x1024xf32>
    %2 = vector.extract_strided_slice %1 {offsets = [0, 0], sizes = [1, 1024], strides = [1, 1]} : vector<2x1024xf32> to vector<1x1024xf32>
    %c0_2 = arith.constant 0 : index
    %3 = memref.load %arg2[%c0_2] : memref<4xf32, #tpu.memory_space<smem>>
    %4 = vector.broadcast %3 : f32 to vector<1x1024xf32>
    %5 = arith.mulf %2, %4 : vector<1x1024xf32>
    %6 = vector.extract_strided_slice %1 {offsets = [1, 0], sizes = [1, 1024], strides = [1, 1]} : vector<2x1024xf32> to vector<1x1024xf32>
    %c1 = arith.constant 1 : index
    %7 = memref.load %arg2[%c1] : memref<4xf32, #tpu.memory_space<smem>>
    %8 = vector.broadcast %7 : f32 to vector<1x1024xf32>
    %9 = arith.mulf %6, %8 : vector<1x1024xf32>
    %10 = arith.addf %5, %9 : vector<1x1024xf32>
    %c0_3 = arith.constant 0 : index
    %11 = memref.load %arg3[%c0_3] : memref<2xf32, #tpu.memory_space<smem>>
    %12 = vector.broadcast %11 : f32 to vector<1x1024xf32>
    %13 = arith.addf %10, %12 : vector<1x1024xf32>
    %cst = arith.constant 0.000000e+00 : f32
    %14 = vector.broadcast %cst : f32 to vector<1x1024xf32>
    %15 = arith.cmpf ogt, %13, %14 : vector<1x1024xf32>
    %16 = arith.mulf %13, %13 : vector<1x1024xf32>
    %cst_4 = arith.constant 0.000000e+00 : f32
    %17 = vector.broadcast %cst_4 : f32 to vector<1x1024xf32>
    %18 = arith.select %15, %16, %17 : vector<1x1024xi1>, vector<1x1024xf32>
    %19 = vector.extract_strided_slice %1 {offsets = [0, 0], sizes = [1, 1024], strides = [1, 1]} : vector<2x1024xf32> to vector<1x1024xf32>
    %c2 = arith.constant 2 : index
    %20 = memref.load %arg2[%c2] : memref<4xf32, #tpu.memory_space<smem>>
    %21 = vector.broadcast %20 : f32 to vector<1x1024xf32>
    %22 = arith.mulf %19, %21 : vector<1x1024xf32>
    %23 = vector.extract_strided_slice %1 {offsets = [1, 0], sizes = [1, 1024], strides = [1, 1]} : vector<2x1024xf32> to vector<1x1024xf32>
    %c3 = arith.constant 3 : index
    %24 = memref.load %arg2[%c3] : memref<4xf32, #tpu.memory_space<smem>>
    %25 = vector.broadcast %24 : f32 to vector<1x1024xf32>
    %26 = arith.mulf %23, %25 : vector<1x1024xf32>
    %27 = arith.addf %22, %26 : vector<1x1024xf32>
    %c1_5 = arith.constant 1 : index
    %28 = memref.load %arg3[%c1_5] : memref<2xf32, #tpu.memory_space<smem>>
    %29 = vector.broadcast %28 : f32 to vector<1x1024xf32>
    %30 = arith.addf %27, %29 : vector<1x1024xf32>
    %cst_6 = arith.constant 0.000000e+00 : f32
    %31 = vector.broadcast %cst_6 : f32 to vector<1x1024xf32>
    %32 = arith.cmpf ogt, %30, %31 : vector<1x1024xf32>
    %33 = arith.mulf %30, %30 : vector<1x1024xf32>
    %cst_7 = arith.constant 0.000000e+00 : f32
    %34 = vector.broadcast %cst_7 : f32 to vector<1x1024xf32>
    %35 = arith.select %32, %33, %34 : vector<1x1024xi1>, vector<1x1024xf32>
    %36 = tpu.iota {dimensions = array<i32: 0>} : vector<8x1024xi32>
    %37 = vector.shape_cast %35 : vector<1x1024xf32> to vector<1x1024xf32>
    %38 = vector.broadcast %37 : vector<1x1024xf32> to vector<8x1024xf32>
    %c0_i32 = arith.constant 0 : i32
    %39 = vector.broadcast %c0_i32 : i32 to vector<8x1024xi32>
    %40 = arith.cmpi eq, %36, %39 : vector<8x1024xi32>
    %41 = vector.shape_cast %18 : vector<1x1024xf32> to vector<1x1024xf32>
    %42 = vector.broadcast %41 : vector<1x1024xf32> to vector<8x1024xf32>
    %43 = arith.select %40, %42, %38 : vector<8x1024xi1>, vector<8x1024xf32>
    %44 = tpu.transpose %43, [1, 0] : vector<8x1024xf32> -> vector<1024x8xf32>
    %45 = vector.extract_strided_slice %44 {offsets = [0, 0], sizes = [1024, 2], strides = [1, 1]} : vector<1024x8xf32> to vector<1024x2xf32>
    %c0_8 = arith.constant 0 : index
    %c0_9 = arith.constant 0 : index
    %c0_10 = arith.constant 0 : index
    %46 = vector.load %arg5[%c0_8, %c0_9, %c0_10] : memref<1x1024x2xf32, #tpu.memory_space<vmem>>, vector<1x1024x2xf32>
    %47 = vector.shape_cast %46 : vector<1x1024x2xf32> to vector<1024x2xf32>
    %48 = vector.shape_cast %45 : vector<1024x2xf32> to vector<1x1024x2xf32>
    tpu.vector_store %arg5[%c0_8, %c0_9, %c0_10], %48 {strides = array<i32>} : memref<1x1024x2xf32, #tpu.memory_space<vmem>>, vector<1x1024x2xf32>,
    return
  }
  func.func @transform_0(%arg0: i32, %arg1: i32) -> i32 {
    %c0_i32 = arith.constant 0 : i32
    %c0_i32_0 = arith.constant 0 : i32
    return %c0_i32 : i32
  }
  func.func @transform_1(%arg0: i32, %arg1: i32) -> i32 {
    %c0_i32 = arith.constant 0 : i32
    %c0_i32_0 = arith.constant 0 : i32
    return %c0_i32 : i32
  }
  func.func @transform_2(%arg0: i32, %arg1: i32) -> (i32, i32, i32) {
    %c0_i32 = arith.constant 0 : i32
    %c0_i32_0 = arith.constant 0 : i32
    return %arg0, %c0_i32, %arg1 : i32, i32, i32
  }
  func.func @transform_3(%arg0: i32, %arg1: i32) -> (i32, i32, i32) {
    %c0_i32 = arith.constant 0 : i32
    %c0_i32_0 = arith.constant 0 : i32
    return %arg0, %arg1, %c0_i32 : i32, i32, i32
  }
}

</mosaic_0001>

<bundles_post_ra>
// kernel: tpu_custom_call.1
= control target key start
LH: loop header
LB: loop body
LE: loop exit
PB: predicated region body
PF: predicated region fallthrough
CT: control target
= control target key end

     0   :  { %8 = vsyncpa [#allocation4], 0  ;;  %s1549_s0 = inlined_call_operand.hbm [shape: f32[4], index: 0, kind: input, shape index: {}]   ;;  %s1550_s1 = inlined_call_operand.hbm [shape: f32[2], index: 1, kind: input, shape index: {}]   ;;  %s1551_s2 = inlined_call_operand.hbm [shape: f32[2,2,1024], index: 2, kind: input, shape index: {}]   ;;  %s1552_s3 = inlined_call_operand.vmem [shape: f32[2,1024,2], index: 3, kind: output, shape index: {}]  }
   0x1   :  { %9 = vsyncpa [#allocation6], 0 }
   0x2   :  { %10 = vsyncpa [#allocation3], 0 }
   0x3   :  { %12 = vsyncpa [#allocation3 + $0x1], 0  ;;  %s1115_s12 = smov 0   ;;  %s1117_s13 = smov 0  }
   0x4   :  { %s1119_s14 = smov 0   ;;  %s1121_s15 = smov 0  }
   0x5   :  { %s1123_s16 = smov 0   ;;  %s1125_s17 = smov 0  }
   0x6 LB: > { %s869_s18 = sadd.s32 4294967295, %s1091_s17   ;;  %p94_p0 = scmp.ne.s32.totalorder %s1075_s13, %s1071_s12  ;;  %s1091_s17 = sphi %s1125_s17, %s18_s17   ;;  %s1087_s16 = sphi %s1123_s16, %s1561_s16   ;;  %s1083_s15 = sphi %s1121_s15, %s1560_s15   ;;  %s1079_s14 = sphi %s1119_s14, %s1559_s14   ;;  %s1075_s13 = sphi %s1117_s13, %s1558_s13   ;;  %s1071_s12 = sphi %s1115_s12, %s1557_s12  }
   0x7   : > { %p1145_p1 = scmp.eq.s32.totalorder %s869_s18, 0  ;;  %p871_p2 = scmp.ge.s32.totalorder %s1091_s17, 1 }
   0x8   : > { %p133_p3 = scmp.lt.s32.totalorder %s1091_s17, 3  ;;  %s145_s23 = sshll.u32 %s1549_s0, 4  ;;  %s146_s23 = int_to_ptr.hbm [resolvable:$true] %s145_s23 }
   0x9   : > { %p1153_p4 = por %p1145_p1, %p94_p0  ;;  %s155_s27 = sshll.u32 %s1550_s1, 4  ;;  %s156_s27 = int_to_ptr.hbm [resolvable:$true] %s155_s27 }
   0xa   : > { %p1160_p5 = pnand %p871_p2, %p133_p3  ;;  %s1093_s28 = smov [#allocation2]  }
   0xb   : > { %s1094_s29 = smov [#allocation5]   ;;  %s30_s30 = sadd.s32 1, %s1087_s16 }
   0xc   : > { %p906_p6 = pneg %p1160_p5  ;;  %s81_s4 = sadd.s32 1, %s1079_s14 }
   0xd   : > { %p32_p8 = scmp.ge.s32.totalorder %s30_s30, 2  ;;  %p88_p9 = scmp.ne.s32.totalorder %s1079_s14, %s1075_s13 }
   0xe   : > { %p907_p7 = pnand %p906_p6, %p1145_p1  ;;  %p89_p10 = scmp.eq.s32.totalorder %s1091_s17, 0 }
   0xf   : > { %p919_p11 = scmp.lt.s32.totalorder %s1091_s17, 2  ;;  %s1563_s30 = smov (%p32_p8, %s30_s30), 0 }
  0x10   : > { %909 = dma.hbm_to_smem (!%p907_p7), %s146_s23, 16, %s1093_s28, [#allocation4]  }
  0x11   : > { %912 = dma.hbm_to_smem (!%p907_p7), %s156_s27, 16, %s1094_s29, [#allocation6]  }
  0x12   : > { %p1179_p12 = por %p89_p10, %p88_p9  ;;  %s166_s6 = sand.u32 1, %s1079_s14  }
  0x13   : > { %s76_s7 = ssub.s32 %s1087_s16, %s1563_s30  ;;  %s875_s8 = sshll.u32 %s166_s6, 4 }
  0x14   : > { %p79_p13 = scmp.eq.s32.totalorder %s76_s7, 0  ;;  %s894_s9 = sshll.u32 %s1087_s16, 4 }
  0x15   : > { %s177_s18 = scalar_lea.hbm %s1551_s2, %s894_s9  ;;  %s170_s21 = scalar_lea.vmem [#allocation7], %s875_s8 }
  0x16   : > { %s1188_s10 = scalar_select %p79_p13, %s1079_s14, %s81_s4  }
  0x17   : > { %s181_s22 = sshll.u32 %s170_s21, 4  ;;  %s179_s23 = sshll.u32 %s177_s18, 4  ;;  %s182_s22 = int_to_ptr.vmem [resolvable:$true] %s181_s22  ;;  %s180_s23 = int_to_ptr.hbm [resolvable:$true] %s179_s23 }
  0x18   : > { %p914_p0 = pnand %p919_p11, %p1179_p12  ;;  %s167_s25 = scalar_lea.sflag [#allocation3], %s166_s6 }
  0x19   : > { %190 = sbr.rel (%p1160_p5) target bundleno = 609 (0x261), region = 32 }
  0x1a   : > { %916 = dma.hbm_to_vmem [thread:$0]  (!%p914_p0), %s180_s23, 256, %s182_s22, %s167_s25  }
  0x1e   : > { %1058 = dma.done.wait (%p1145_p1), [#allocation4], 16  }
  0x1f   : > { %1060 = vsyncadd (%p1145_p1), [#allocation4], 4294967280 }
  0x20   : > { %1062 = dma.done.wait (%p1145_p1), [#allocation6], 16  }
  0x21   : > { %1064 = vsyncadd (%p1145_p1), [#allocation6], 4294967280  ;;  %s202_s26 = sand.u32 1, %s1075_s13  }
  0x22   : > { %s1208_s27 = sshll.u32 %s202_s26, 4  ;;  %s203_s24 = scalar_lea.sflag [#allocation3], %s202_s26 }
  0x23   : > { %s206_s28 = scalar_lea.vmem [#allocation7], %s1208_s27 }
  0x24   : > { %1066 = dma.done.wait (%p1153_p4), %s203_s24, 256  }
  0x25   : > { %1068 = vsyncadd (%p1153_p4), %s203_s24, 4294967040 }
  0x26   : > { %212 = sfence }
  0x27   : > { %s1215_s29 = sld [smem:[#allocation2]]  ;;  %v246_v0 = vld [vmem:[%s206_s28] sm:$0xff]  ;;  %v304_v15 = vlaneseq  ;;  %v247_v33 = vld [vmem:[%s206_s28 + $0x8] sm:$0xff]  ;;  %p237_p1 = scmp.lt.s32.totalorder %s1083_s15, 1  ;;  %vm623_vm5 = vcmask 15360  }
  0x28   : > { %s1217_s19 = sld [smem:[#allocation2 + $0x1]] }
  0x29   : > { %s1219_s4 = sld [smem:[#allocation5]]  ;;  %v1235_v20 = vshrl.u32 %v304_v15, 7  ;;  %s1565_s15 = smov (!%p237_p1, %s1083_s15), 1 }
  0x2a   : > { %s1221_s5 = sld [smem:[#allocation2 + $0x2]]  ;;  %s895_s7 = sshll.u32 %s1565_s15, 10 }
  0x2b   : > { %s1223_s6 = sld [smem:[#allocation2 + $0x3]]  ;;  %vm332_vm2 = vcmp.eq.s32.totalorder %v1235_v20, 0  ;;  %s1261_s11 = scalar_lea.vmem %s1552_s3, %s895_s7 }
  0x2c   : > { %s1228_s20 = sld [smem:[#allocation5 + $0x1]] }
  0x2d   : > { %v249_v1 = vstv %s1215_s29 }
  0x2e   : > { %v253_v2 = vstv %s1217_s19  ;;  %v250_v3 = vmul.f32 %v249_v1, %v246_v0  ;;  %v251_v36 = vmul.f32 %v249_v1, %v247_v33 }
  0x2f   : > { %v254_v4 = vmul.f32 %v253_v2, %v246_v0  ;;  %v267_v8 = vstv %s1219_s4  ;;  %v255_v34 = vmul.f32 %v253_v2, %v247_v33 }
  0x30   : > { %v277_v5 = vstv %s1221_s5 }
  0x31   : > { %v885_v6 = vrot.slane %v254_v4, 9  ;;  %v281_v7 = vstv %s1223_s6  ;;  %v278_v9 = vmul.f32 %v277_v5, %v246_v0  ;;  %v886_v37 = vrot.slane %v255_v34, 9 }
  0x32   : > { %v282_v10 = vmul.f32 %v281_v7, %v246_v0  ;;  %v295_v14 = vstv %s1228_s20  ;;  %v283_v35 = vmul.f32 %v281_v7, %v247_v33  ;;  %v279_v38 = vmul.f32 %v277_v5, %v247_v33 }
  0x33   : > { %v264_v11 = vadd.f32 %v885_v6, %v250_v3  ;;  %v265_v40 = vadd.f32 %v886_v37, %v251_v36 }
  0x34   : > { %v889_v12 = vrot.slane %v282_v10, 9  ;;  %v890_v39 = vrot.slane %v283_v35, 9 }
  0x35   : > { %v268_v13 = vadd.f32 %v267_v8, %v264_v11  ;;  %v269_v42 = vadd.f32 %v267_v8, %v265_v40 }
  0x36   : > { %v292_v16 = vadd.f32 %v889_v12, %v278_v9  ;;  %v293_v41 = vadd.f32 %v890_v39, %v279_v38 }
  0x37   : > { %vm270_vm0 = vcmp.gt.f32.partialorder %v268_v13, 0.0  ;;  %v272_v17 = vmul.f32 %v268_v13, %v268_v13  ;;  %vm271_vm3 = vcmp.gt.f32.partialorder %v269_v42, 0.0  ;;  %v273_v44 = vmul.f32 %v269_v42, %v269_v42 }
  0x38   : > { %v296_v18 = vadd.f32 %v295_v14, %v292_v16  ;;  %v297_v43 = vadd.f32 %v295_v14, %v293_v41 }
  0x39   : > { %v274_v19 = vsel %vm270_vm0, %v272_v17, 0.0  ;;  %v1244_v46 = vsel %vm271_vm3, %v273_v44, 0.0 }
  0x3a   : > { %vm298_vm1 = vcmp.gt.f32.partialorder %v296_v18, 0.0  ;;  %v300_v21 = vmul.f32 %v296_v18, %v296_v18  ;;  %v337_v22 = vperm.slane %v274_v19, 4  ;;  %v335_v23 = vperm.slane %v274_v19, 0 }
  0x3b   : > { %vm299_vm4 = vcmp.gt.f32.partialorder %v297_v43, 0.0  ;;  %v301_v45 = vmul.f32 %v297_v43, %v297_v43  ;;  %v339_v48 = vperm.slane %v1244_v46, 0  ;;  %v338_v54 = vperm.slane %v274_v19, 6 }
  0x3c   : > { %v302_v24 = vsel %vm298_vm1, %v300_v21, 0.0  ;;  %v353_v26 = vperm.slane %v337_v22, 0  ;;  %v351_v28 = vperm.slane %v335_v23, 0  ;;  %v336_v56 = vperm.slane %v274_v19, 2 }
  0x3d   : > { %v310_v25 = vperm.slane %v302_v24, 4  ;;  %v308_v27 = vperm.slane %v302_v24, 0  ;;  %v1246_v47 = vsel %vm299_vm4, %v301_v45, 0.0  ;;  %v355_v50 = vperm.slane %v339_v48, 0 }
  0x3e   : > { %v312_v49 = vperm.slane %v1246_v47, 0  ;;  %v311_v53 = vperm.slane %v302_v24, 6  ;;  %v309_v55 = vperm.slane %v302_v24, 2  ;;  %v354_v58 = vperm.slane %v338_v54, 0 }
  0x3f   : > { %v326_v29 = vperm.slane %v310_v25, 0  ;;  %v324_v30 = vperm.slane %v308_v27, 0  ;;  %v352_v60 = vperm.slane %v336_v56, 0  ;;  %v313_v17 = vperm.slane %v1246_v47, 2 }
  0x40   : > { %v328_v51 = vperm.slane %v312_v49, 0  ;;  %v327_v57 = vperm.slane %v311_v53, 0  ;;  %v325_v59 = vperm.slane %v309_v55, 0  ;;  %v340_v18 = vperm.slane %v1244_v46, 2 }
  0x41   : > { %v361_v31 = vsel %vm332_vm2, %v353_v26, %v326_v29  ;;  %v359_v32 = vsel %vm332_vm2, %v351_v28, %v324_v30  ;;  %v329_v19 = vperm.slane %v313_v17, 0  ;;  %v315_v27 = vperm.slane %v1246_v47, 6 }
  0x42   : > { %431 = vxpose.xlu1.b32.start.end [1/1] (short) %v361_v31, 128  ;;  %367 = vxpose.xlu0.b32.start.end [1/1] (short) %v359_v32, 128  ;;  %v363_v52 = vsel %vm332_vm2, %v355_v50, %v328_v51  ;;  %v362_v61 = vsel %vm332_vm2, %v354_v58, %v327_v57  ;;  %v360_v62 = vsel %vm332_vm2, %v352_v60, %v325_v59  ;;  %v356_v21 = vperm.slane %v340_v18, 0 }
  0x43   : > { %495 = vxpose.xlu2.b32.start.end [1/1] (short) %v363_v52, 128  ;;  %v342_v28 = vperm.slane %v1244_v46, 6  ;;  %v314_v29 = vperm.slane %v1246_v47, 4  ;;  %v341_v30 = vperm.slane %v1244_v46, 4  ;;  %v331_v31 = vperm.slane %v315_v27, 0 }
  0x44   : > { %v364_v22 = vsel %vm332_vm2, %v356_v21, %v329_v19 }
  0x45   : > { %v358_v32 = vperm.slane %v342_v28, 0  ;;  %v330_v33 = vperm.slane %v314_v29, 0  ;;  %v357_v34 = vperm.slane %v341_v30, 0 }
  0x47   : > { %v366_v37 = vsel %vm332_vm2, %v358_v32, %v331_v31  ;;  %v365_v38 = vsel %vm332_vm2, %v357_v34, %v330_v33 }
  0xc2   : > { %463 = vxpose.xlu1.b32.start.end [1/1] (short) %v362_v61, 128  ;;  %399 = vxpose.xlu0.b32.start.end [1/1] (short) %v360_v62, 128 }
  0xc3   : > { %527 = vxpose.xlu2.b32.start.end [1/1] (short) %v364_v22, 128 }
  0xdc   : > { %v511_v41 = vpop.trf.xlu2 }
  0xdd   : > { %688 = vst.msk [vmem:[%s1261_s11 + $0x200] sm:$0xff] %vm623_vm5, %v511_v41 }
  0xe4   : > { %v512_v43 = vpop.trf.xlu2 }
  0xe5   : > { %689 = vst.msk [vmem:[%s1261_s11 + $0x208] sm:$0xff] %vm623_vm5, %v512_v43 }
  0xe6   : > { %v447_v63 = vpop.trf.xlu1  ;;  %v383_v0 = vpop.trf.xlu0 }
  0xe7   : > { %656 = vst.msk [vmem:[%s1261_s11 + $0x100] sm:$0xff] %vm623_vm5, %v447_v63 }
  0xe8   : > { %624 = vst.msk [vmem:[%s1261_s11] sm:$0xff] %vm623_vm5, %v383_v0 }
  0xec   : > { %v513_v46 = vpop.trf.xlu2 }
  0xed   : > { %690 = vst.msk [vmem:[%s1261_s11 + $0x210] sm:$0xff] %vm623_vm5, %v513_v46 }
  0xee   : > { %v448_v1 = vpop.trf.xlu1  ;;  %v384_v2 = vpop.trf.xlu0 }
  0xef   : > { %657 = vst.msk [vmem:[%s1261_s11 + $0x108] sm:$0xff] %vm623_vm5, %v448_v1 }
  0xf0   : > { %625 = vst.msk [vmem:[%s1261_s11 + $0x8] sm:$0xff] %vm623_vm5, %v384_v2 }
  0xf4   : > { %v514_v49 = vpop.trf.xlu2 }
  0xf5   : > { %691 = vst.msk [vmem:[%s1261_s11 + $0x218] sm:$0xff] %vm623_vm5, %v514_v49 }
  0xf6   : > { %v449_v3 = vpop.trf.xlu1  ;;  %v385_v4 = vpop.trf.xlu0 }
  0xf7   : > { %658 = vst.msk [vmem:[%s1261_s11 + $0x110] sm:$0xff] %vm623_vm5, %v449_v3 }
  0xf8   : > { %626 = vst.msk [vmem:[%s1261_s11 + $0x10] sm:$0xff] %vm623_vm5, %v385_v4 }
  0xfc   : > { %v515_v52 = vpop.trf.xlu2 }
  0xfd   : > { %692 = vst.msk [vmem:[%s1261_s11 + $0x220] sm:$0xff] %vm623_vm5, %v515_v52 }
  0xfe   : > { %v450_v5 = vpop.trf.xlu1  ;;  %v386_v6 = vpop.trf.xlu0 }
  0xff   : > { %659 = vst.msk [vmem:[%s1261_s11 + $0x118] sm:$0xff] %vm623_vm5, %v450_v5 }
 0x100   : > { %627 = vst.msk [vmem:[%s1261_s11 + $0x18] sm:$0xff] %vm623_vm5, %v386_v6 }
 0x104   : > { %v516_v55 = vpop.trf.xlu2 }
 0x105   : > { %693 = vst.msk [vmem:[%s1261_s11 + $0x228] sm:$0xff] %vm623_vm5, %v516_v55 }
 0x106   : > { %v451_v7 = vpop.trf.xlu1  ;;  %v387_v8 = vpop.trf.xlu0 }
 0x107   : > { %660 = vst.msk [vmem:[%s1261_s11 + $0x120] sm:$0xff] %vm623_vm5, %v451_v7 }
 0x108   : > { %628 = vst.msk [vmem:[%s1261_s11 + $0x20] sm:$0xff] %vm623_vm5, %v387_v8 }
 0x10c   : > { %v517_v58 = vpop.trf.xlu2 }
 0x10d   : > { %694 = vst.msk [vmem:[%s1261_s11 + $0x230] sm:$0xff] %vm623_vm5, %v517_v58 }
 0x10e   : > { %v452_v9 = vpop.trf.xlu1  ;;  %v388_v10 = vpop.trf.xlu0 }
 0x10f   : > { %661 = vst.msk [vmem:[%s1261_s11 + $0x128] sm:$0xff] %vm623_vm5, %v452_v9 }
 0x110   : > { %629 = vst.msk [vmem:[%s1261_s11 + $0x28] sm:$0xff] %vm623_vm5, %v388_v10 }
 0x114   : > { %v518_v61 = vpop.trf.xlu2 }
 0x115   : > { %695 = vst.msk [vmem:[%s1261_s11 + $0x238] sm:$0xff] %vm623_vm5, %v518_v61 }
 0x116   : > { %v453_v11 = vpop.trf.xlu1  ;;  %v389_v12 = vpop.trf.xlu0 }
 0x117   : > { %662 = vst.msk [vmem:[%s1261_s11 + $0x130] sm:$0xff] %vm623_vm5, %v453_v11 }
 0x118   : > { %630 = vst.msk [vmem:[%s1261_s11 + $0x30] sm:$0xff] %vm623_vm5, %v389_v12 }
 0x11c   : > { %v519_v0 = vpop.trf.xlu2 }
 0x11d   : > { %696 = vst.msk [vmem:[%s1261_s11 + $0x240] sm:$0xff] %vm623_vm5, %v519_v0 }
 0x11e   : > { %v454_v13 = vpop.trf.xlu1  ;;  %v390_v14 = vpop.trf.xlu0 }
 0x11f   : > { %663 = vst.msk [vmem:[%s1261_s11 + $0x138] sm:$0xff] %vm623_vm5, %v454_v13 }
 0x120   : > { %631 = vst.msk [vmem:[%s1261_s11 + $0x38] sm:$0xff] %vm623_vm5, %v390_v14 }
 0x124   : > { %v520_v3 = vpop.trf.xlu2 }
 0x125   : > { %697 = vst.msk [vmem:[%s1261_s11 + $0x248] sm:$0xff] %vm623_vm5, %v520_v3 }
 0x126   : > { %v455_v15 = vpop.trf.xlu1  ;;  %v391_v16 = vpop.trf.xlu0 }
 0x127   : > { %664 = vst.msk [vmem:[%s1261_s11 + $0x140] sm:$0xff] %vm623_vm5, %v455_v15 }
 0x128   : > { %632 = vst.msk [vmem:[%s1261_s11 + $0x40] sm:$0xff] %vm623_vm5, %v391_v16 }
 0x12c   : > { %v521_v6 = vpop.trf.xlu2 }
 0x12d   : > { %698 = vst.msk [vmem:[%s1261_s11 + $0x250] sm:$0xff] %vm623_vm5, %v521_v6 }
 0x12e   : > { %v456_v23 = vpop.trf.xlu1  ;;  %v392_v24 = vpop.trf.xlu0 }
 0x12f   : > { %665 = vst.msk [vmem:[%s1261_s11 + $0x148] sm:$0xff] %vm623_vm5, %v456_v23 }
 0x130   : > { %633 = vst.msk [vmem:[%s1261_s11 + $0x48] sm:$0xff] %vm623_vm5, %v392_v24 }
 0x134   : > { %v522_v9 = vpop.trf.xlu2 }
 0x135   : > { %699 = vst.msk [vmem:[%s1261_s11 + $0x258] sm:$0xff] %vm623_vm5, %v522_v9 }
 0x136   : > { %v457_v25 = vpop.trf.xlu1  ;;  %v393_v26 = vpop.trf.xlu0 }
 0x137   : > { %666 = vst.msk [vmem:[%s1261_s11 + $0x150] sm:$0xff] %vm623_vm5, %v457_v25 }
 0x138   : > { %634 = vst.msk [vmem:[%s1261_s11 + $0x50] sm:$0xff] %vm623_vm5, %v393_v26 }
 0x13c   : > { %v523_v12 = vpop.trf.xlu2 }
 0x13d   : > { %700 = vst.msk [vmem:[%s1261_s11 + $0x260] sm:$0xff] %vm623_vm5, %v523_v12 }
 0x13e   : > { %v458_v35 = vpop.trf.xlu1  ;;  %v394_v36 = vpop.trf.xlu0 }
 0x13f   : > { %667 = vst.msk [vmem:[%s1261_s11 + $0x158] sm:$0xff] %vm623_vm5, %v458_v35 }
 0x140   : > { %635 = vst.msk [vmem:[%s1261_s11 + $0x58] sm:$0xff] %vm623_vm5, %v394_v36 }
 0x142   : > { %591 = vxpose.xlu1.b32.start.end [1/1] (short) %v366_v37, 128  ;;  %559 = vxpose.xlu0.b32.start.end [1/1] (short) %v365_v38, 128 }
 0x144   : > { %v524_v15 = vpop.trf.xlu2 }
 0x145   : > { %701 = vst.msk [vmem:[%s1261_s11 + $0x268] sm:$0xff] %vm623_vm5, %v524_v15 }
 0x146   : > { %v459_v39 = vpop.trf.xlu1  ;;  %v395_v40 = vpop.trf.xlu0 }
 0x147   : > { %668 = vst.msk [vmem:[%s1261_s11 + $0x160] sm:$0xff] %vm623_vm5, %v459_v39 }
 0x148   : > { %636 = vst.msk [vmem:[%s1261_s11 + $0x60] sm:$0xff] %vm623_vm5, %v395_v40 }
 0x14c   : > { %v525_v18 = vpop.trf.xlu2 }
 0x14d   : > { %702 = vst.msk [vmem:[%s1261_s11 + $0x270] sm:$0xff] %vm623_vm5, %v525_v18 }
 0x14e   : > { %v460_v20 = vpop.trf.xlu1  ;;  %v396_v42 = vpop.trf.xlu0 }
 0x14f   : > { %669 = vst.msk [vmem:[%s1261_s11 + $0x168] sm:$0xff] %vm623_vm5, %v460_v20 }
 0x150   : > { %637 = vst.msk [vmem:[%s1261_s11 + $0x68] sm:$0xff] %vm623_vm5, %v396_v42 }
 0x154   : > { %v526_v22 = vpop.trf.xlu2 }
 0x155   : > { %703 = vst.msk [vmem:[%s1261_s11 + $0x278] sm:$0xff] %vm623_vm5, %v526_v22 }
 0x156   : > { %v461_v44 = vpop.trf.xlu1  ;;  %v397_v45 = vpop.trf.xlu0 }
 0x157   : > { %670 = vst.msk [vmem:[%s1261_s11 + $0x170] sm:$0xff] %vm623_vm5, %v461_v44 }
 0x158   : > { %638 = vst.msk [vmem:[%s1261_s11 + $0x70] sm:$0xff] %vm623_vm5, %v397_v45 }
 0x15c   : > { %v543_v25 = vpop.trf.xlu2 }
 0x15d   : > { %704 = vst.msk [vmem:[%s1261_s11 + $0x280] sm:$0xff] %vm623_vm5, %v543_v25 }
 0x15e   : > { %v462_v47 = vpop.trf.xlu1  ;;  %v398_v48 = vpop.trf.xlu0 }
 0x15f   : > { %671 = vst.msk [vmem:[%s1261_s11 + $0x178] sm:$0xff] %vm623_vm5, %v462_v47 }
 0x160   : > { %639 = vst.msk [vmem:[%s1261_s11 + $0x78] sm:$0xff] %vm623_vm5, %v398_v48 }
 0x164   : > { %v544_v28 = vpop.trf.xlu2 }
 0x165   : > { %705 = vst.msk [vmem:[%s1261_s11 + $0x288] sm:$0xff] %vm623_vm5, %v544_v28 }
 0x166   : > { %v479_v50 = vpop.trf.xlu1  ;;  %v415_v51 = vpop.trf.xlu0 }
 0x167   : > { %672 = vst.msk [vmem:[%s1261_s11 + $0x180] sm:$0xff] %vm623_vm5, %v479_v50 }
 0x168   : > { %640 = vst.msk [vmem:[%s1261_s11 + $0x80] sm:$0xff] %vm623_vm5, %v415_v51 }
 0x16c   : > { %v545_v31 = vpop.trf.xlu2 }
 0x16d   : > { %706 = vst.msk [vmem:[%s1261_s11 + $0x290] sm:$0xff] %vm623_vm5, %v545_v31 }
 0x16e   : > { %v480_v53 = vpop.trf.xlu1  ;;  %v416_v54 = vpop.trf.xlu0 }
 0x16f   : > { %673 = vst.msk [vmem:[%s1261_s11 + $0x188] sm:$0xff] %vm623_vm5, %v480_v53 }
 0x170   : > { %641 = vst.msk [vmem:[%s1261_s11 + $0x88] sm:$0xff] %vm623_vm5, %v416_v54 }
 0x174   : > { %v546_v34 = vpop.trf.xlu2 }
 0x175   : > { %707 = vst.msk [vmem:[%s1261_s11 + $0x298] sm:$0xff] %vm623_vm5, %v546_v34 }
 0x176   : > { %v481_v56 = vpop.trf.xlu1  ;;  %v417_v57 = vpop.trf.xlu0 }
 0x177   : > { %674 = vst.msk [vmem:[%s1261_s11 + $0x190] sm:$0xff] %vm623_vm5, %v481_v56 }
 0x178   : > { %642 = vst.msk [vmem:[%s1261_s11 + $0x90] sm:$0xff] %vm623_vm5, %v417_v57 }
 0x17c   : > { %v547_v37 = vpop.trf.xlu2 }
 0x17d   : > { %708 = vst.msk [vmem:[%s1261_s11 + $0x2a0] sm:$0xff] %vm623_vm5, %v547_v37 }
 0x17e   : > { %v482_v59 = vpop.trf.xlu1  ;;  %v418_v60 = vpop.trf.xlu0 }
 0x17f   : > { %675 = vst.msk [vmem:[%s1261_s11 + $0x198] sm:$0xff] %vm623_vm5, %v482_v59 }
 0x180   : > { %643 = vst.msk [vmem:[%s1261_s11 + $0x98] sm:$0xff] %vm623_vm5, %v418_v60 }
 0x184   : > { %v548_v40 = vpop.trf.xlu2 }
 0x185   : > { %709 = vst.msk [vmem:[%s1261_s11 + $0x2a8] sm:$0xff] %vm623_vm5, %v548_v40 }
 0x186   : > { %v483_v62 = vpop.trf.xlu1  ;;  %v419_v63 = vpop.trf.xlu0 }
 0x187   : > { %676 = vst.msk [vmem:[%s1261_s11 + $0x1a0] sm:$0xff] %vm623_vm5, %v483_v62 }
 0x188   : > { %644 = vst.msk [vmem:[%s1261_s11 + $0xa0] sm:$0xff] %vm623_vm5, %v419_v63 }
 0x18c   : > { %v549_v42 = vpop.trf.xlu2 }
 0x18d   : > { %710 = vst.msk [vmem:[%s1261_s11 + $0x2b0] sm:$0xff] %vm623_vm5, %v549_v42 }
 0x18e   : > { %v484_v1 = vpop.trf.xlu1  ;;  %v420_v2 = vpop.trf.xlu0 }
 0x18f   : > { %677 = vst.msk [vmem:[%s1261_s11 + $0x1a8] sm:$0xff] %vm623_vm5, %v484_v1 }
 0x190   : > { %645 = vst.msk [vmem:[%s1261_s11 + $0xa8] sm:$0xff] %vm623_vm5, %v420_v2 }
 0x194   : > { %v550_v45 = vpop.trf.xlu2 }
 0x195   : > { %711 = vst.msk [vmem:[%s1261_s11 + $0x2b8] sm:$0xff] %vm623_vm5, %v550_v45 }
 0x196   : > { %v485_v4 = vpop.trf.xlu1  ;;  %v421_v5 = vpop.trf.xlu0 }
 0x197   : > { %678 = vst.msk [vmem:[%s1261_s11 + $0x1b0] sm:$0xff] %vm623_vm5, %v485_v4 }
 0x198   : > { %646 = vst.msk [vmem:[%s1261_s11 + $0xb0] sm:$0xff] %vm623_vm5, %v421_v5 }
 0x19c   : > { %v551_v48 = vpop.trf.xlu2 }
 0x19d   : > { %712 = vst.msk [vmem:[%s1261_s11 + $0x2c0] sm:$0xff] %vm623_vm5, %v551_v48 }
 0x19e   : > { %v486_v7 = vpop.trf.xlu1  ;;  %v422_v8 = vpop.trf.xlu0 }
 0x19f   : > { %679 = vst.msk [vmem:[%s1261_s11 + $0x1b8] sm:$0xff] %vm623_vm5, %v486_v7 }
 0x1a0   : > { %647 = vst.msk [vmem:[%s1261_s11 + $0xb8] sm:$0xff] %vm623_vm5, %v422_v8 }
 0x1a4   : > { %v552_v51 = vpop.trf.xlu2 }
 0x1a5   : > { %713 = vst.msk [vmem:[%s1261_s11 + $0x2c8] sm:$0xff] %vm623_vm5, %v552_v51 }
 0x1a6   : > { %v487_v10 = vpop.trf.xlu1  ;;  %v423_v11 = vpop.trf.xlu0 }
 0x1a7   : > { %680 = vst.msk [vmem:[%s1261_s11 + $0x1c0] sm:$0xff] %vm623_vm5, %v487_v10 }
 0x1a8   : > { %648 = vst.msk [vmem:[%s1261_s11 + $0xc0] sm:$0xff] %vm623_vm5, %v423_v11 }
 0x1ac   : > { %v553_v54 = vpop.trf.xlu2 }
 0x1ad   : > { %714 = vst.msk [vmem:[%s1261_s11 + $0x2d0] sm:$0xff] %vm623_vm5, %v553_v54 }
 0x1ae   : > { %v488_v13 = vpop.trf.xlu1  ;;  %v424_v14 = vpop.trf.xlu0 }
 0x1af   : > { %681 = vst.msk [vmem:[%s1261_s11 + $0x1c8] sm:$0xff] %vm623_vm5, %v488_v13 }
 0x1b0   : > { %649 = vst.msk [vmem:[%s1261_s11 + $0xc8] sm:$0xff] %vm623_vm5, %v424_v14 }
 0x1b4   : > { %v554_v57 = vpop.trf.xlu2 }
 0x1b5   : > { %715 = vst.msk [vmem:[%s1261_s11 + $0x2d8] sm:$0xff] %vm623_vm5, %v554_v57 }
 0x1b6   : > { %v489_v16 = vpop.trf.xlu1  ;;  %v425_v17 = vpop.trf.xlu0 }
 0x1b7   : > { %682 = vst.msk [vmem:[%s1261_s11 + $0x1d0] sm:$0xff] %vm623_vm5, %v489_v16 }
 0x1b8   : > { %650 = vst.msk [vmem:[%s1261_s11 + $0xd0] sm:$0xff] %vm623_vm5, %v425_v17 }
 0x1bc   : > { %v555_v60 = vpop.trf.xlu2 }
 0x1bd   : > { %716 = vst.msk [vmem:[%s1261_s11 + $0x2e0] sm:$0xff] %vm623_vm5, %v555_v60 }
 0x1be   : > { %v490_v19 = vpop.trf.xlu1  ;;  %v426_v21 = vpop.trf.xlu0 }
 0x1bf   : > { %683 = vst.msk [vmem:[%s1261_s11 + $0x1d8] sm:$0xff] %vm623_vm5, %v490_v19 }
 0x1c0   : > { %651 = vst.msk [vmem:[%s1261_s11 + $0xd8] sm:$0xff] %vm623_vm5, %v426_v21 }
 0x1c4   : > { %v556_v63 = vpop.trf.xlu2 }
 0x1c5   : > { %717 = vst.msk [vmem:[%s1261_s11 + $0x2e8] sm:$0xff] %vm623_vm5, %v556_v63 }
 0x1c6   : > { %v491_v23 = vpop.trf.xlu1  ;;  %v427_v24 = vpop.trf.xlu0 }
 0x1c7   : > { %684 = vst.msk [vmem:[%s1261_s11 + $0x1e0] sm:$0xff] %vm623_vm5, %v491_v23 }
 0x1c8   : > { %652 = vst.msk [vmem:[%s1261_s11 + $0xe0] sm:$0xff] %vm623_vm5, %v427_v24 }
 0x1cc   : > { %v557_v2 = vpop.trf.xlu2 }
 0x1cd   : > { %718 = vst.msk [vmem:[%s1261_s11 + $0x2f0] sm:$0xff] %vm623_vm5, %v557_v2 }
 0x1ce   : > { %v492_v26 = vpop.trf.xlu1  ;;  %v428_v27 = vpop.trf.xlu0 }
 0x1cf   : > { %685 = vst.msk [vmem:[%s1261_s11 + $0x1e8] sm:$0xff] %vm623_vm5, %v492_v26 }
 0x1d0   : > { %653 = vst.msk [vmem:[%s1261_s11 + $0xe8] sm:$0xff] %vm623_vm5, %v428_v27 }
 0x1d4   : > { %v558_v5 = vpop.trf.xlu2 }
 0x1d5   : > { %719 = vst.msk [vmem:[%s1261_s11 + $0x2f8] sm:$0xff] %vm623_vm5, %v558_v5 }
 0x1d6   : > { %v493_v29 = vpop.trf.xlu1  ;;  %v429_v30 = vpop.trf.xlu0 }
 0x1d7   : > { %686 = vst.msk [vmem:[%s1261_s11 + $0x1f0] sm:$0xff] %vm623_vm5, %v493_v29 }
 0x1d8   : > { %654 = vst.msk [vmem:[%s1261_s11 + $0xf0] sm:$0xff] %vm623_vm5, %v429_v30 }
 0x1de   : > { %v494_v32 = vpop.trf.xlu1  ;;  %v430_v33 = vpop.trf.xlu0 }
 0x1df   : > { %687 = vst.msk [vmem:[%s1261_s11 + $0x1f8] sm:$0xff] %vm623_vm5, %v494_v32 }
 0x1e0   : > { %655 = vst.msk [vmem:[%s1261_s11 + $0xf8] sm:$0xff] %vm623_vm5, %v430_v33 }
 0x1e6   : > { %v607_v35 = vpop.trf.xlu1  ;;  %v575_v36 = vpop.trf.xlu0 }
 0x1e7   : > { %736 = vst.msk [vmem:[%s1261_s11 + $0x380] sm:$0xff] %vm623_vm5, %v607_v35 }
 0x1e8   : > { %720 = vst.msk [vmem:[%s1261_s11 + $0x300] sm:$0xff] %vm623_vm5, %v575_v36 }
 0x1ee   : > { %v608_v38 = vpop.trf.xlu1  ;;  %v576_v39 = vpop.trf.xlu0 }
 0x1ef   : > { %737 = vst.msk [vmem:[%s1261_s11 + $0x388] sm:$0xff] %vm623_vm5, %v608_v38 }
 0x1f0   : > { %721 = vst.msk [vmem:[%s1261_s11 + $0x308] sm:$0xff] %vm623_vm5, %v576_v39 }
 0x1f6   : > { %v609_v41 = vpop.trf.xlu1  ;;  %v577_v20 = vpop.trf.xlu0 }
 0x1f7   : > { %738 = vst.msk [vmem:[%s1261_s11 + $0x390] sm:$0xff] %vm623_vm5, %v609_v41 }
 0x1f8   : > { %722 = vst.msk [vmem:[%s1261_s11 + $0x310] sm:$0xff] %vm623_vm5, %v577_v20 }
 0x1fe   : > { %v610_v43 = vpop.trf.xlu1  ;;  %v578_v44 = vpop.trf.xlu0 }
 0x1ff   : > { %739 = vst.msk [vmem:[%s1261_s11 + $0x398] sm:$0xff] %vm623_vm5, %v610_v43 }
 0x200   : > { %723 = vst.msk [vmem:[%s1261_s11 + $0x318] sm:$0xff] %vm623_vm5, %v578_v44 }
 0x206   : > { %v611_v46 = vpop.trf.xlu1  ;;  %v579_v47 = vpop.trf.xlu0 }
 0x207   : > { %740 = vst.msk [vmem:[%s1261_s11 + $0x3a0] sm:$0xff] %vm623_vm5, %v611_v46 }
 0x208   : > { %724 = vst.msk [vmem:[%s1261_s11 + $0x320] sm:$0xff] %vm623_vm5, %v579_v47 }
 0x20e   : > { %v612_v49 = vpop.trf.xlu1  ;;  %v580_v50 = vpop.trf.xlu0 }
 0x20f   : > { %741 = vst.msk [vmem:[%s1261_s11 + $0x3a8] sm:$0xff] %vm623_vm5, %v612_v49 }
 0x210   : > { %725 = vst.msk [vmem:[%s1261_s11 + $0x328] sm:$0xff] %vm623_vm5, %v580_v50 }
 0x216   : > { %v613_v52 = vpop.trf.xlu1  ;;  %v581_v53 = vpop.trf.xlu0 }
 0x217   : > { %742 = vst.msk [vmem:[%s1261_s11 + $0x3b0] sm:$0xff] %vm623_vm5, %v613_v52 }
 0x218   : > { %726 = vst.msk [vmem:[%s1261_s11 + $0x330] sm:$0xff] %vm623_vm5, %v581_v53 }
 0x21e   : > { %v614_v55 = vpop.trf.xlu1  ;;  %v582_v56 = vpop.trf.xlu0 }
 0x21f   : > { %743 = vst.msk [vmem:[%s1261_s11 + $0x3b8] sm:$0xff] %vm623_vm5, %v614_v55 }
 0x220   : > { %727 = vst.msk [vmem:[%s1261_s11 + $0x338] sm:$0xff] %vm623_vm5, %v582_v56 }
 0x226   : > { %v615_v58 = vpop.trf.xlu1  ;;  %v583_v59 = vpop.trf.xlu0 }
 0x227   : > { %744 = vst.msk [vmem:[%s1261_s11 + $0x3c0] sm:$0xff] %vm623_vm5, %v615_v58 }
 0x228   : > { %728 = vst.msk [vmem:[%s1261_s11 + $0x340] sm:$0xff] %vm623_vm5, %v583_v59 }
 0x22e   : > { %v616_v61 = vpop.trf.xlu1  ;;  %v584_v62 = vpop.trf.xlu0 }
 0x22f   : > { %745 = vst.msk [vmem:[%s1261_s11 + $0x3c8] sm:$0xff] %vm623_vm5, %v616_v61 }
 0x230   : > { %729 = vst.msk [vmem:[%s1261_s11 + $0x348] sm:$0xff] %vm623_vm5, %v584_v62 }
 0x236   : > { %v617_v0 = vpop.trf.xlu1  ;;  %v585_v1 = vpop.trf.xlu0 }
 0x237   : > { %746 = vst.msk [vmem:[%s1261_s11 + $0x3d0] sm:$0xff] %vm623_vm5, %v617_v0 }
 0x238   : > { %730 = vst.msk [vmem:[%s1261_s11 + $0x350] sm:$0xff] %vm623_vm5, %v585_v1 }
 0x23e   : > { %v618_v3 = vpop.trf.xlu1  ;;  %v586_v4 = vpop.trf.xlu0 }
 0x23f   : > { %747 = vst.msk [vmem:[%s1261_s11 + $0x3d8] sm:$0xff] %vm623_vm5, %v618_v3 }
 0x240   : > { %731 = vst.msk [vmem:[%s1261_s11 + $0x358] sm:$0xff] %vm623_vm5, %v586_v4 }
 0x246   : > { %v619_v6 = vpop.trf.xlu1  ;;  %v587_v7 = vpop.trf.xlu0 }
 0x247   : > { %748 = vst.msk [vmem:[%s1261_s11 + $0x3e0] sm:$0xff] %vm623_vm5, %v619_v6 }
 0x248   : > { %732 = vst.msk [vmem:[%s1261_s11 + $0x360] sm:$0xff] %vm623_vm5, %v587_v7 }
 0x24e   : > { %v620_v8 = vpop.trf.xlu1  ;;  %v588_v9 = vpop.trf.xlu0 }
 0x24f   : > { %749 = vst.msk [vmem:[%s1261_s11 + $0x3e8] sm:$0xff] %vm623_vm5, %v620_v8 }
 0x250   : > { %733 = vst.msk [vmem:[%s1261_s11 + $0x368] sm:$0xff] %vm623_vm5, %v588_v9 }
 0x256   : > { %v621_v10 = vpop.trf.xlu1  ;;  %v589_v11 = vpop.trf.xlu0 }
 0x257   : > { %750 = vst.msk [vmem:[%s1261_s11 + $0x3f0] sm:$0xff] %vm623_vm5, %v621_v10 }
 0x258   : > { %734 = vst.msk [vmem:[%s1261_s11 + $0x370] sm:$0xff] %vm623_vm5, %v589_v11 }
 0x25e   : > { %v622_v12 = vpop.trf.xlu1  ;;  %v590_v13 = vpop.trf.xlu0 }
 0x25f   : > { %751 = vst.msk [vmem:[%s1261_s11 + $0x3f8] sm:$0xff] %vm623_vm5, %v622_v12 }
 0x260   : > { %735 = vst.msk [vmem:[%s1261_s11 + $0x378] sm:$0xff] %vm623_vm5, %v590_v13 }
 0x261 PF: > { %s18_s17 = sadd.s32 1, %s1091_s17   ;;  %s1557_s12 = smov %s1075_s13 }
 0x262   : > { %p15_p2 = scmp.ge.s32.totalorder %s18_s17, 4   ;;  %s1558_s13 = smov %s1079_s14 }
 0x263   : > { %s1559_s14 = smov %s1188_s10  ;;  %s1560_s15 = smov %s1087_s16 }
 0x264   : > { %s1561_s16 = smov %s1563_s30  ;;  %17 = sbr.rel (!%p15_p2) target bundleno = 6 (0x6), region = 81 }
 0x269   :  { %782 = vsyncpa [#allocation3], 1 }
 0x26a   :  { %784 = vsyncpa [#allocation3 + $0x1], 1 }
 0x26b   :  { %785 = vsyncpa [#allocation4], 1 }
 0x26c   :  { %787 = vsyncpa [#allocation4 + $0x1], 1 }
 0x26d   :  { %788 = vsyncpa [#allocation6], 1 }

</bundles_post_ra>
